<compile_context>
chip_gen: v5e
topology: v5e:2x2
jax: 0.10.0
libtpu: 0.0.40
codegen_flags: <defaults>
</compile_context>

<pallas_src>
import functools

import jax
import jax.numpy as jnp
from jax.experimental import pallas as pl
from jax.experimental.pallas import tpu as pltpu

# ---- static configuration (matches the module globals) ----------------------
FEATURE_SIZE = 32     # FEATHER_SIZE == feature_size
COMPUTE_SIZE = 32
HEADS = 4
OUT_DIM = 128         # nn.Linear(compute_size * HEADS, 128)
SEQ_LEN = 8
BATCH = 4

HC = HEADS * COMPUTE_SIZE      # 128 -- lane-dense head-concat width


# ------------------------------ Pallas kernel --------------------------------
def attention_kernel(x_ref, w_ref, b_ref, out_ref, *,
                     seq_len, batch_p, feat, hc, out_dim):
    """Fused multi-head additive attention forward.

    x_ref  : (S*Bp + Bp, F)      bf16  rows [0:S*Bp) = flattened d2, rows [S*Bp:) = d1
    w_ref  : (2*F + 4*hc, hc)    bf16  packed weight slab (see pack_params)
    b_ref  : (2, hc)             f32   row0 = b1 (zero-padded), row1 = bcc
    out_ref: (Bp, out_dim)       f32
    """
    S, Bp, F = seq_len, batch_p, feat
    R = S * Bp

    # ---- static row views into the packed weight slab (offsets all x16) -----
    w1    = w_ref[0 * F:1 * F, :]            # (F,  hc) linear1, zero-padded cols >= C
    wv    = w_ref[1 * F:2 * F, :]            # (F,  hc) weight_v tiled over heads
    o = 2 * F
    ws_u  = w_ref[o + 0 * hc:o + 1 * hc, :]  # (hc, hc) ws rows acting on d3 (zero-padded)
    ws_l  = w_ref[o + 1 * hc:o + 2 * hc, :]  # (hc, hc) ws rows acting on d4 (zero-padded)
    p_big = w_ref[o + 2 * hc:o + 3 * hc, :]  # (hc, hc) block-diag P: logit per head block
    wcc   = w_ref[o + 3 * hc:o + 4 * hc, :]  # (hc, out_dim) final cc layer

    b1  = b_ref[0:1, :]                      # (1, hc)  f32
    bcc = b_ref[1:2, :]                      # (1, out_dim) f32

    x = x_ref[...]                           # (R + Bp, F) bf16

    # linear1 for the d2 rows and the d1 rows in a single MXU op
    lin = jnp.maximum(
        jnp.dot(x, w1, preferred_element_type=jnp.float32) + b1, 0.0)   # (R+Bp, hc)
    d3  = lin[0:R, :]                        # (R,  hc)  (cols >= C are 0)
    d4s = lin[R:R + Bp, :]                   # (Bp, hc)

    # tv, pre-tiled per head: column block h equals tanh(d2 @ weight_v)
    tv = jnp.tanh(
        jnp.dot(x[0:R, :], wv, preferred_element_type=jnp.float32))     # (R, hc)

    # us = tanh(d5 @ ws) for all heads at once; d4 contribution computed once
    # at (Bp, hc) and broadcast over the sequence axis.
    us_d3 = jnp.dot(d3.astype(jnp.bfloat16), ws_u,
                    preferred_element_type=jnp.float32)                  # (R,  hc)
    us_d4 = jnp.dot(d4s.astype(jnp.bfloat16), ws_l,
                    preferred_element_type=jnp.float32)                  # (Bp, hc)
    us = jnp.tanh(us_d3.reshape(S, Bp, hc) + us_d4[None, :, :])          # (S, Bp, hc)

    # logits, replicated across each head's 32-lane block via block-diagonal P
    logits = jnp.dot(us.reshape(R, hc).astype(jnp.bfloat16), p_big,
                     preferred_element_type=jnp.float32
                     ).reshape(S, Bp, hc)                                # (S, Bp, hc)

    # softmax over the sequence axis (per batch element / head), all heads at once
    m = jnp.max(logits, axis=0, keepdims=True)
    e = jnp.exp(logits - m)
    att = e * pl.reciprocal(jnp.sum(e, axis=0, keepdims=True), approx=True)

    # attention-weighted sum over seq; result is already the head-concat (Bp, hc)
    cat = jnp.sum(att * tv.reshape(S, Bp, hc), axis=0)                   # (Bp, hc)

    out = jnp.maximum(
        jnp.dot(cat.astype(jnp.bfloat16), wcc,
                preferred_element_type=jnp.float32) + bcc, 0.0)          # (Bp, out_dim)
    out_ref[...] = out.astype(out_ref.dtype)


# ------------------------------ host-side packing ----------------------------
def pack_params(params, feat=FEATURE_SIZE, c=COMPUTE_SIZE, heads=HEADS):
    """Pack all weights into one bf16 (2F + 4*HC, HC) slab + one f32 (2, HC) bias slab."""
    hc = heads * c
    assert hc == OUT_DIM and params["wcc"].shape == (hc, OUT_DIM)

    def pad(a, rows, cols):
        return jnp.zeros((rows, cols), jnp.float32).at[:a.shape[0], :a.shape[1]].set(a)

    w1_pad  = pad(params["w1"], feat, hc)                                # (F, 128)
    wv_tile = jnp.concatenate([params["wv"]] * heads, axis=1)            # (F, 128)
    ws = params["ws"]                                                    # (H, 2C, C)
    ws_u = pad(jnp.concatenate([ws[h, :c, :] for h in range(heads)], axis=1), hc, hc)
    ws_l = pad(jnp.concatenate([ws[h, c:, :] for h in range(heads)], axis=1), hc, hc)
    # block-diagonal P: P[h*C + k, h*C + j] = ps[h][k]  (logit broadcast over the block)
    p_big = jnp.zeros((hc, hc), jnp.float32)
    for h in range(heads):
        blk = jnp.broadcast_to(params["ps"][h].T, (c, c))                # each column = ps[h]
        p_big = p_big.at[h * c:(h + 1) * c, h * c:(h + 1) * c].set(blk)

    wslab = jnp.concatenate(
        [w1_pad, wv_tile, ws_u, ws_l, p_big, params["wcc"]], axis=0
    ).astype(jnp.bfloat16)                                               # (576, 128)
    bias = jnp.concatenate([pad(params["b1"], 1, hc), params["bcc"]], axis=0)  # (2, 128) f32
    return wslab, bias


# ------------------------------ wrapper ---------------------------------------
def attention_forward(d1, d2, params, d2_size=None):
    del d2_size   # unused by the torch forward
    S, B, F = d2.shape
    Bp = (B + 7) // 8 * 8          # full-sublane output rows

    # pad the batch dim and stack the d1 rows below the flattened d2 rows
    d1p = jnp.zeros((Bp, F), jnp.float32).at[:B].set(d1)
    d2p = jnp.zeros((S, Bp, F), jnp.float32).at[:, :B].set(d2)
    x = jnp.concatenate([d2p.reshape(S * Bp, F), d1p], axis=0).astype(jnp.bfloat16)

    # NOTE: in a real model pack_params would be done once, not per call.
    wslab, bias = pack_params(params)

    kernel = functools.partial(
        attention_kernel, seq_len=S, batch_p=Bp, feat=F, hc=HC, out_dim=OUT_DIM)

    # TODO(synk): when many (d1, d2) instances are processed per step, add a
    # leading grid axis over instance blocks marked "parallel" (uses both v7x
    # TensorCores and amortises the per-call launch overhead).
    out = pl.pallas_call(
        kernel,
        out_shape=jax.ShapeDtypeStruct((Bp, OUT_DIM), jnp.float32),
        grid=(1,),
        in_specs=[
            pl.BlockSpec(x.shape, lambda i: (0, 0)),
            pl.BlockSpec(wslab.shape, lambda i: (0, 0)),
            pl.BlockSpec(bias.shape, lambda i: (0, 0)),
        ],
        out_specs=pl.BlockSpec((Bp, OUT_DIM), lambda i: (0, 0)),
        compiler_params=pltpu.CompilerParams(
            dimension_semantics=("arbitrary",)),
    )(x, wslab, bias)
    return out[:B]


# ------------------------------ reference -------------------------------------
def reference(d1, d2, params):
    """Pure-JAX mirror of Attention.forward using the kernel's precision policy
    (bf16 matmul operands, f32 accumulation, f32 element-wise math)."""
    S, B, F = d2.shape
    C, H = COMPUTE_SIZE, HEADS
    bf = lambda a: a.astype(jnp.bfloat16)
    dot = lambda a, b: jnp.dot(bf(a), bf(b), preferred_element_type=jnp.float32)

    d2f = d2.reshape(S * B, F)
    d3 = jax.nn.relu(dot(d2f, params["w1"]) + params["b1"])
    d4 = jnp.tile(jax.nn.relu(dot(d1, params["w1"]) + params["b1"]), (S, 1))
    d5 = jnp.concatenate([d3, d4], axis=1)
    tv = jnp.tanh(dot(d2f, params["wv"])).reshape(S, B, C).transpose(1, 0, 2)  # (B,S,C)
    outs = []
    for h in range(H):
        us = jnp.tanh(dot(d5, params["ws"][h])).reshape(S, B, C)
        atts = jnp.einsum("sbc,c->sb", bf(us), bf(params["ps"][h][0]),
                          preferred_element_type=jnp.float32).T               # (B, S)
        att = jax.nn.softmax(atts, axis=1)[:, :, None]
        outs.append(jnp.sum(tv * att, axis=1))
    vs = jnp.concatenate(outs, axis=1)
    return jax.nn.relu(dot(vs, params["wcc"]) + params["bcc"])


# ------------------------------ main -------------------------------------------
if __name__ == "__main__":
    key = jax.random.PRNGKey(0)
    keys = jax.random.split(key, 10)

    # deterministic synthetic parameters (shapes from the module __init__)
    params = {
        "w1":  0.1 * jax.random.normal(keys[0], (FEATURE_SIZE, COMPUTE_SIZE), jnp.float32),
        "b1":  0.1 * jax.random.normal(keys[1], (1, COMPUTE_SIZE), jnp.float32),
        "wv":  0.2 * jax.random.normal(keys[2], (FEATURE_SIZE, COMPUTE_SIZE), jnp.float32),
        "ws":  0.2 * jax.random.normal(keys[3], (HEADS, 2 * COMPUTE_SIZE, COMPUTE_SIZE), jnp.float32),
        "ps":  0.2 * jax.random.normal(keys[4], (HEADS, 1, COMPUTE_SIZE), jnp.float32),
        "wcc": 0.1 * jax.random.normal(keys[5], (COMPUTE_SIZE * HEADS, OUT_DIM), jnp.float32),
        "bcc": 0.1 * jax.random.normal(keys[6], (1, OUT_DIM), jnp.float32),
    }

    # inputs: d1 (BATCH, FEATURE), d2 (SEQ, BATCH, FEATURE)
    d1 = jax.random.normal(keys[7], (BATCH, FEATURE_SIZE), jnp.float32)
    d2 = jax.random.normal(keys[8], (SEQ_LEN, BATCH, FEATURE_SIZE), jnp.float32)

    out = attention_forward(d1, d2, params, d2_size=None)
    out = jax.block_until_ready(out)

    ref = reference(d1, d2, params)
    assert out.shape == (BATCH, OUT_DIM), out.shape
    assert jnp.allclose(out, ref, atol=2e-2, rtol=2e-2), \
        float(jnp.max(jnp.abs(out - ref)))

    print("KERNEL_OK")
</pallas_src>

<mosaic_0001>
module attributes {stable_mosaic.version = 11 : i64} {
  func.func @attention_kernel(%arg0: i32, %arg1: memref<72x32xbf16, #tpu.memory_space<vmem>>, %arg2: memref<576x128xbf16, #tpu.memory_space<vmem>>, %arg3: memref<2x128xf32, #tpu.memory_space<vmem>>, %arg4: memref<8x128xf32, #tpu.memory_space<vmem>>) attributes {dimension_semantics = [#tpu.dimension_semantics<arbitrary>], iteration_bounds = array<i64: 1>, scalar_prefetch = 0 : i64, scratch_operands = 0 : i64, tpu.core_type = #tpu.core_type<tc>, window_params = [{pipeline_mode = #tpu.pipeline_mode<synchronous>, transform_indices = @transform_0, window_bounds = array<i64: 72, 32>}, {pipeline_mode = #tpu.pipeline_mode<synchronous>, transform_indices = @transform_1, window_bounds = array<i64: 576, 128>}, {pipeline_mode = #tpu.pipeline_mode<synchronous>, transform_indices = @transform_2, window_bounds = array<i64: 2, 128>}, {pipeline_mode = #tpu.pipeline_mode<synchronous>, transform_indices = @transform_3, window_bounds = array<i64: 8, 128>}]} {
    %c0 = arith.constant 0 : index
    %c0_0 = arith.constant 0 : index
    %0 = vector.load %arg2[%c0, %c0_0] : memref<576x128xbf16, #tpu.memory_space<vmem>>, vector<32x128xbf16>
    %c32 = arith.constant 32 : index
    %c0_1 = arith.constant 0 : index
    %1 = vector.load %arg2[%c32, %c0_1] : memref<576x128xbf16, #tpu.memory_space<vmem>>, vector<32x128xbf16>
    %c64 = arith.constant 64 : index
    %c0_2 = arith.constant 0 : index
    %2 = vector.load %arg2[%c64, %c0_2] : memref<576x128xbf16, #tpu.memory_space<vmem>>, vector<128x128xbf16>
    %c192 = arith.constant 192 : index
    %c0_3 = arith.constant 0 : index
    %3 = vector.load %arg2[%c192, %c0_3] : memref<576x128xbf16, #tpu.memory_space<vmem>>, vector<128x128xbf16>
    %c320 = arith.constant 320 : index
    %c0_4 = arith.constant 0 : index
    %4 = vector.load %arg2[%c320, %c0_4] : memref<576x128xbf16, #tpu.memory_space<vmem>>, vector<128x128xbf16>
    %c448 = arith.constant 448 : index
    %c0_5 = arith.constant 0 : index
    %5 = vector.load %arg2[%c448, %c0_5] : memref<576x128xbf16, #tpu.memory_space<vmem>>, vector<128x128xbf16>
    %c0_6 = arith.constant 0 : index
    %c0_7 = arith.constant 0 : index
    %6 = vector.load %arg3[%c0_6, %c0_7] : memref<2x128xf32, #tpu.memory_space<vmem>>, vector<1x128xf32>
    %c1 = arith.constant 1 : index
    %c0_8 = arith.constant 0 : index
    %7 = vector.load %arg3[%c1, %c0_8] : memref<2x128xf32, #tpu.memory_space<vmem>>, vector<1x128xf32>
    %c0_9 = arith.constant 0 : index
    %c0_10 = arith.constant 0 : index
    %8 = vector.load %arg1[%c0_9, %c0_10] : memref<72x32xbf16, #tpu.memory_space<vmem>>, vector<72x32xbf16>
    %cst = arith.constant dense<0.000000e+00> : vector<72x128xf32>
    %9 = tpu.matmul %8, %0, %cst {dimension_numbers = #tpu.dot_dimension_numbers<[1], [0], [0], [1], [0, 0, 1, 1], [], []>} : vector<72x32xbf16>, vector<32x128xbf16>, vector<72x128xf32> -> vector<72x128xf32>
    %10 = vector.broadcast %6 : vector<1x128xf32> to vector<72x128xf32>
    %11 = arith.addf %9, %10 : vector<72x128xf32>
    %cst_11 = arith.constant 0.000000e+00 : f32
    %12 = vector.broadcast %cst_11 : f32 to vector<72x128xf32>
    %13 = arith.maximumf %11, %12 : vector<72x128xf32>
    %14 = vector.extract_strided_slice %13 {offsets = [0, 0], sizes = [64, 128], strides = [1, 1]} : vector<72x128xf32> to vector<64x128xf32>
    %15 = vector.extract_strided_slice %13 {offsets = [64, 0], sizes = [8, 128], strides = [1, 1]} : vector<72x128xf32> to vector<8x128xf32>
    %16 = vector.extract_strided_slice %8 {offsets = [0, 0], sizes = [64, 32], strides = [1, 1]} : vector<72x32xbf16> to vector<64x32xbf16>
    %cst_12 = arith.constant dense<0.000000e+00> : vector<64x128xf32>
    %17 = tpu.matmul %16, %1, %cst_12 {dimension_numbers = #tpu.dot_dimension_numbers<[1], [0], [0], [1], [0, 0, 1, 1], [], []>} : vector<64x32xbf16>, vector<32x128xbf16>, vector<64x128xf32> -> vector<64x128xf32>
    %18 = math.tanh %17 : vector<64x128xf32>
    %19 = arith.truncf %14 : vector<64x128xf32> to vector<64x128xbf16>
    %cst_13 = arith.constant dense<0.000000e+00> : vector<64x128xf32>
    %20 = tpu.matmul %19, %2, %cst_13 {dimension_numbers = #tpu.dot_dimension_numbers<[1], [0], [0], [1], [0, 0, 1, 1], [], []>} : vector<64x128xbf16>, vector<128x128xbf16>, vector<64x128xf32> -> vector<64x128xf32>
    %21 = arith.truncf %15 : vector<8x128xf32> to vector<8x128xbf16>
    %cst_14 = arith.constant dense<0.000000e+00> : vector<8x128xf32>
    %22 = tpu.matmul %21, %3, %cst_14 {dimension_numbers = #tpu.dot_dimension_numbers<[1], [0], [0], [1], [0, 0, 1, 1], [], []>} : vector<8x128xbf16>, vector<128x128xbf16>, vector<8x128xf32> -> vector<8x128xf32>
    %23 = vector.shape_cast %20 : vector<64x128xf32> to vector<8x8x128xf32>
    %24 = vector.shape_cast %22 : vector<8x128xf32> to vector<1x8x128xf32>
    %25 = vector.broadcast %24 : vector<1x8x128xf32> to vector<8x8x128xf32>
    %26 = arith.addf %23, %25 : vector<8x8x128xf32>
    %27 = math.tanh %26 : vector<8x8x128xf32>
    %28 = vector.shape_cast %27 : vector<8x8x128xf32> to vector<64x128xf32>
    %29 = arith.truncf %28 : vector<64x128xf32> to vector<64x128xbf16>
    %cst_15 = arith.constant dense<0.000000e+00> : vector<64x128xf32>
    %30 = tpu.matmul %29, %4, %cst_15 {dimension_numbers = #tpu.dot_dimension_numbers<[1], [0], [0], [1], [0, 0, 1, 1], [], []>} : vector<64x128xbf16>, vector<128x128xbf16>, vector<64x128xf32> -> vector<64x128xf32>
    %31 = vector.shape_cast %30 : vector<64x128xf32> to vector<8x8x128xf32>
    %cst_16 = arith.constant dense<0xFF800000> : vector<8x128xf32>
    %32 = vector.multi_reduction <maximumf>, %31, %cst_16 [0] : vector<8x8x128xf32> to vector<8x128xf32>
    %33 = vector.shape_cast %32 : vector<8x128xf32> to vector<1x8x128xf32>
    %34 = vector.broadcast %33 : vector<1x8x128xf32> to vector<8x8x128xf32>
    %35 = arith.subf %31, %34 : vector<8x8x128xf32>
    %36 = math.exp %35 : vector<8x8x128xf32>
    %cst_17 = arith.constant dense<0.000000e+00> : vector<8x128xf32>
    %37 = vector.multi_reduction <add>, %36, %cst_17 [0] : vector<8x8x128xf32> to vector<8x128xf32>
    %38 = vector.shape_cast %37 : vector<8x128xf32> to vector<1x8x128xf32>
    %39 = tpu.reciprocal %38 {approx = true} : vector<1x8x128xf32> -> vector<1x8x128xf32>
    %40 = vector.broadcast %39 : vector<1x8x128xf32> to vector<8x8x128xf32>
    %41 = arith.mulf %36, %40 : vector<8x8x128xf32>
    %42 = vector.shape_cast %18 : vector<64x128xf32> to vector<8x8x128xf32>
    %43 = arith.mulf %41, %42 : vector<8x8x128xf32>
    %cst_18 = arith.constant dense<0.000000e+00> : vector<8x128xf32>
    %44 = vector.multi_reduction <add>, %43, %cst_18 [0] : vector<8x8x128xf32> to vector<8x128xf32>
    %45 = arith.truncf %44 : vector<8x128xf32> to vector<8x128xbf16>
    %cst_19 = arith.constant dense<0.000000e+00> : vector<8x128xf32>
    %46 = tpu.matmul %45, %5, %cst_19 {dimension_numbers = #tpu.dot_dimension_numbers<[1], [0], [0], [1], [0, 0, 1, 1], [], []>} : vector<8x128xbf16>, vector<128x128xbf16>, vector<8x128xf32> -> vector<8x128xf32>
    %47 = vector.broadcast %7 : vector<1x128xf32> to vector<8x128xf32>
    %48 = arith.addf %46, %47 : vector<8x128xf32>
    %cst_20 = arith.constant 0.000000e+00 : f32
    %49 = vector.broadcast %cst_20 : f32 to vector<8x128xf32>
    %50 = arith.maximumf %48, %49 : vector<8x128xf32>
    %c0_21 = arith.constant 0 : index
    %c0_22 = arith.constant 0 : index
    %51 = vector.load %arg4[%c0_21, %c0_22] : memref<8x128xf32, #tpu.memory_space<vmem>>, vector<8x128xf32>
    tpu.vector_store %arg4[%c0_21, %c0_22], %50 {strides = array<i32>} : memref<8x128xf32, #tpu.memory_space<vmem>>, vector<8x128xf32>,
    return
  }
  func.func @transform_0(%arg0: i32) -> (i32, i32) {
    %c0_i32 = arith.constant 0 : i32
    %c0_i32_0 = arith.constant 0 : i32
    %c0_i32_1 = arith.constant 0 : i32
    return %c0_i32, %c0_i32_0 : i32, i32
  }
  func.func @transform_1(%arg0: i32) -> (i32, i32) {
    %c0_i32 = arith.constant 0 : i32
    %c0_i32_0 = arith.constant 0 : i32
    %c0_i32_1 = arith.constant 0 : i32
    return %c0_i32, %c0_i32_0 : i32, i32
  }
  func.func @transform_2(%arg0: i32) -> (i32, i32) {
    %c0_i32 = arith.constant 0 : i32
    %c0_i32_0 = arith.constant 0 : i32
    %c0_i32_1 = arith.constant 0 : i32
    return %c0_i32, %c0_i32_0 : i32, i32
  }
  func.func @transform_3(%arg0: i32) -> (i32, i32) {
    %c0_i32 = arith.constant 0 : i32
    %c0_i32_0 = arith.constant 0 : i32
    %c0_i32_1 = arith.constant 0 : i32
    return %c0_i32, %c0_i32_0 : i32, i32
  }
}

</mosaic_0001>

<bundles_post_ra>
// kernel: tpu_custom_call.1
= control target key start
LH: loop header
LB: loop body
LE: loop exit
PB: predicated region body
PF: predicated region fallthrough
CT: control target
= control target key end

     0   :  { %8 = vsyncpa [#allocation3], 0  ;;  %s1047_s0 = inlined_call_operand.vmem [shape: bf16[72,32], index: 0, kind: input, shape index: {}]   ;;  %s1048_s1 = inlined_call_operand.hbm [shape: bf16[576,128], index: 1, kind: input, shape index: {}]   ;;  %s1049_s2 = inlined_call_operand.vmem [shape: f32[2,128], index: 2, kind: input, shape index: {}]   ;;  %s1050_s3 = inlined_call_operand.hbm [shape: f32[8,128], index: 3, kind: output, shape index: {}]  }
   0x1   :  { %9 = vsyncpa [#allocation4], 0  ;;  %s16_s14 = sshll.u32 %s1048_s1, 4  ;;  %s959_s15 = smov [#allocation2]   ;;  %s17_s14 = int_to_ptr.hbm [resolvable:$true] %s16_s14 }
   0x2   :  { %s18_s16 = sshll.u32 %s959_s15, 4  ;;  %s960_s17 = smov 64   ;;  %s19_s16 = int_to_ptr.vmem [resolvable:$true] %s18_s16 }
   0x3   :  { %s961_s18 = smov 4  }
   0x4   :  { %24 = dma.hbm_to_vmem [thread:$0]  %s17_s14, 4608, %s19_s16, [#allocation3], %s960_s17, %s960_s17, %s961_s18  }
   0x5   :  { %955 = dma.done.wait [#allocation3], 4608  }
   0x6   :  { %956 = vsyncadd [#allocation3], 4294962688  ;;  %v812_v0 = vld [vmem:[#allocation2 + $0x8] sm:$0xff]  ;;  %v811_v1 = vld [vmem:[#allocation2] sm:$0xff]  ;;  %vm151_vm0 = vcmask 261120   ;;  %s962_s4 = smov [#allocation5]  }
   0x7   :  { %173 = vmatpush.bf16.msra.mxu0 %v812_v0  ;;  %v989_v2 = vld [vmem:[%s1047_s0] sm:$0xff]  ;;  %v996_v3 = vld [vmem:[%s1047_s0 + $0x8] sm:$0xff]  ;;  %v1003_v4 = vld [vmem:[%s1047_s0 + $0x10] sm:$0xff]  ;;  %s630_s5 = sshll.u32 %s962_s4, 4  ;;  %s632_s8 = sshll.u32 %s1050_s3, 4  ;;  %s631_s5 = int_to_ptr.vmem [resolvable:$true] %s630_s5  ;;  %s633_s8 = int_to_ptr.hbm [resolvable:$true] %s632_s8 }
   0x8   :  { %v822_v5 = vld [vmem:[#allocation2 + $0x58] sm:$0xff]  ;;  %v821_v7 = vld [vmem:[#allocation2 + $0x50] sm:$0xff]  ;;  %v820_v8 = vld [vmem:[#allocation2 + $0x48] sm:$0xff] }
   0x9   :  { %v830_v6 = vld [vmem:[#allocation2 + $0x98] sm:$0xff]  ;;  %310 = vmatpush.bf16.msra.mxu2 %v822_v5  ;;  %v819_v9 = vld [vmem:[#allocation2 + $0x40] sm:$0xff]  ;;  %v817_v15 = vld [vmem:[#allocation2 + $0x30] sm:$0xff] }
   0xa   :  { %v1010_v10 = vld [vmem:[%s1047_s0 + $0x18] sm:$0xff]  ;;  %v114_v11 = vld [vmem:[%s1047_s0 + $0x20] sm:$0xf]  ;;  %v829_v16 = vld [vmem:[#allocation2 + $0x90] sm:$0xff] }
   0xb   :  { %174 = vmatpush.bf16.msra.mxu0 %v811_v1  ;;  %v133_v12 = vunpack.c.l.b16 %v114_v11  ;;  %v818_v14 = vld [vmem:[#allocation2 + $0x38] sm:$0xff]  ;;  %v816_v17 = vld [vmem:[#allocation2 + $0x28] sm:$0xff]  ;;  %v815_v18 = vld [vmem:[#allocation2 + $0x20] sm:$0xff] }
   0xc   :  { %v828_v19 = vld [vmem:[#allocation2 + $0x88] sm:$0xff]  ;;  %v827_v20 = vld [vmem:[#allocation2 + $0x80] sm:$0xff]  ;;  %v826_v21 = vld [vmem:[#allocation2 + $0x78] sm:$0xff] }
   0xd   :  { %311 = vmatpush.bf16.msra.mxu2 %v821_v7  ;;  %v138_v13 = vpack.c.b16 %v133_v12, %v133_v12  ;;  %v855_v23 = vld [vmem:[%s1049_s2] ss:$0 sm:$0xff]  ;;  %v825_v29 = vld [vmem:[#allocation2 + $0x70] sm:$0xff]  ;;  %v824_v32 = vld [vmem:[#allocation2 + $0x68] sm:$0xff] }
   0xe   :  { %666 = vmatmul.msk.bf16.vlgmr.msra.gmra.mxu0 %vm151_vm0, %v989_v2  ;;  %v823_v38 = vld [vmem:[#allocation2 + $0x60] sm:$0xff]  ;;  %v838_v59 = vld [vmem:[#allocation2 + $0xd8] sm:$0xff]  ;;  %v837_v60 = vld [vmem:[#allocation2 + $0xd0] sm:$0xff] }
   0xf   :  { %388 = vmatpush.bf16.msrb.mxu0 %v830_v6  ;;  %469 = vmatpush.bf16.msra.mxu3 %v838_v59  ;;  %v836_v61 = vld [vmem:[#allocation2 + $0xc8] sm:$0xff]  ;;  %v835_v62 = vld [vmem:[#allocation2 + $0xc0] sm:$0xff]  ;;  %v834_v63 = vld [vmem:[#allocation2 + $0xb8] sm:$0xff] }
  0x10   :  { %v833_v0 = vld [vmem:[#allocation2 + $0xb0] sm:$0xff]  ;;  %v832_v1 = vld [vmem:[#allocation2 + $0xa8] sm:$0xff]  ;;  %v831_v6 = vld [vmem:[#allocation2 + $0xa0] sm:$0xff] }
  0x11   :  { %312 = vmatpush.bf16.msra.mxu2 %v820_v8 }
  0x13   :  { %389 = vmatpush.bf16.msrb.mxu0 %v829_v16  ;;  %470 = vmatpush.bf16.msra.mxu3 %v837_v60 }
  0x15   :  { %313 = vmatpush.bf16.msra.mxu2 %v819_v9  ;;  %v814_v9 = vld [vmem:[#allocation2 + $0x18] sm:$0xff] }
  0x16   :  { %227 = vmatpush.bf16.msra.mxu1 %v814_v9 }
  0x17   :  { %390 = vmatpush.bf16.msrb.mxu0 %v828_v19  ;;  %471 = vmatpush.bf16.msra.mxu3 %v836_v61 }
  0x19   :  { %314 = vmatpush.bf16.msra.mxu2 %v818_v14 }
  0x1b   :  { %391 = vmatpush.bf16.msrb.mxu0 %v827_v20  ;;  %472 = vmatpush.bf16.msra.mxu3 %v835_v62 }
  0x1d   :  { %315 = vmatpush.bf16.msra.mxu2 %v817_v15 }
  0x1e   :  { %667 = vmatmul.msk.bf16.gmra.mxu0 %vm151_vm0, %v996_v3 }
  0x1f   :  { %392 = vmatpush.bf16.msrb.mxu0 %v826_v21  ;;  %473 = vmatpush.bf16.msra.mxu3 %v834_v63  ;;  %v813_v21 = vld [vmem:[#allocation2 + $0x10] sm:$0xff] }
  0x20   :  { %228 = vmatpush.bf16.msra.mxu1 %v813_v21  ;;  %v841_v21 = vld [vmem:[#allocation2 + $0xf0] sm:$0xff] }
  0x21   :  { %316 = vmatpush.bf16.msra.mxu2 %v816_v17 }
  0x23   :  { %393 = vmatpush.bf16.msrb.mxu0 %v825_v29  ;;  %474 = vmatpush.bf16.msra.mxu3 %v833_v0  ;;  %v844_v0 = vld [vmem:[#allocation2 + $0x108] sm:$0xff] }
  0x24   :  { %679 = vmatmul.msk.bf16.vlgmr.msra.gmra.mxu1 %vm151_vm0, %v989_v2 }
  0x25   :  { %317 = vmatpush.bf16.msra.mxu2 %v815_v18 }
  0x27   :  { %394 = vmatpush.bf16.msrb.mxu0 %v824_v32  ;;  %475 = vmatpush.bf16.msra.mxu3 %v832_v1 }
  0x2b   :  { %395 = vmatpush.bf16.msrb.mxu0 %v823_v38  ;;  %476 = vmatpush.bf16.msra.mxu3 %v831_v6 }
  0x2e   :  { %668 = vmatmul.msk.bf16.gmra.mxu0 %vm151_vm0, %v1003_v4 }
  0x34   :  { %680 = vmatmul.msk.bf16.gmra.mxu1 %vm151_vm0, %v996_v3 }
  0x3e   :  { %669 = vmatmul.msk.bf16.gmra.mxu0 %vm151_vm0, %v1010_v10 }
  0x44   :  { %681 = vmatmul.msk.bf16.gmra.mxu1 %vm151_vm0, %v1003_v4 }
  0x4e   :  { %670 = vmatmul.msk.bf16.gmra.mxu0 %vm151_vm0, %v138_v13 }
  0x54   :  { %682 = vmatmul.msk.bf16.gmra.mxu1 %vm151_vm0, %v1010_v10 }
  0x8b   :  { %v176_v22 = vpop.f32.mrf.mxu0 }
  0x8c   :  { %v177_v24 = vadd.f32 %v855_v23, %v176_v22 }
  0x8e   :  { %v200_v27 = vmax.f32 %v177_v24, 0.0 }
  0x93   :  { %v178_v25 = vpop.f32.mrf.mxu0 }
  0x94   :  { %v179_v26 = vadd.f32 %v855_v23, %v178_v25 }
  0x96   :  { %v201_v28 = vmax.f32 %v179_v26, 0.0 }
  0x98   :  { %v258_v30 = vpack.c.bf16 %v201_v28, %v200_v27 }
  0x9a   :  { %318 = vmatmul.bf16.vlgmr.msra.gmra.mxu2 %v258_v30 }
  0x9b   :  { %v181_v31 = vpop.f32.mrf.mxu0 }
  0x9c   :  { %v182_v33 = vadd.f32 %v855_v23, %v181_v31 }
  0x9e   :  { %v202_v36 = vmax.f32 %v182_v33, 0.0 }
  0xa3   :  { %v183_v34 = vpop.f32.mrf.mxu0 }
  0xa4   :  { %v184_v35 = vadd.f32 %v855_v23, %v183_v34 }
  0xa6   :  { %v203_v37 = vmax.f32 %v184_v35, 0.0 }
  0xa8   :  { %v259_v39 = vpack.c.bf16 %v203_v37, %v202_v36 }
  0xaa   :  { %323 = vmatmul.bf16.gmra.mxu2 %v259_v39 }
  0xab   :  { %v186_v40 = vpop.f32.mrf.mxu0 }
  0xac   :  { %v187_v41 = vadd.f32 %v855_v23, %v186_v40  ;;  %v846_v40 = vld [vmem:[#allocation2 + $0x118] sm:$0xff] }
  0xad   :  { %610 = vmatpush.bf16.msrb.mxu1 %v846_v40 }
  0xae   :  { %v204_v44 = vmax.f32 %v187_v41, 0.0 }
  0xb3   :  { %v188_v42 = vpop.f32.mrf.mxu0 }
  0xb4   :  { %v189_v43 = vadd.f32 %v855_v23, %v188_v42  ;;  %v1029_v42 = vpop.f32.mrf.mxu1 }
  0xb6   :  { %v205_v45 = vmax.f32 %v189_v43, 0.0 }
  0xb8   :  { %v260_v46 = vpack.c.bf16 %v205_v45, %v204_v44 }
  0xba   :  { %328 = vmatmul.bf16.gmra.mxu2 %v260_v46 }
  0xbb   :  { %v191_v47 = vpop.f32.mrf.mxu0 }
  0xbc   :  { %v192_v48 = vadd.f32 %v855_v23, %v191_v47  ;;  %v1031_v44 = vpop.f32.mrf.mxu1 }
  0xbe   :  { %v206_v51 = vmax.f32 %v192_v48, 0.0 }
  0xc3   :  { %v193_v49 = vpop.f32.mrf.mxu0 }
  0xc4   :  { %v194_v50 = vadd.f32 %v855_v23, %v193_v49  ;;  %v1033_v46 = vpop.f32.mrf.mxu1 }
  0xc6   :  { %v207_v52 = vmax.f32 %v194_v50, 0.0 }
  0xc8   :  { %v261_v53 = vpack.c.bf16 %v207_v52, %v206_v51 }
  0xca   :  { %333 = vmatmul.bf16.gmra.mxu2 %v261_v53 }
  0xcb   :  { %v196_v54 = vpop.f32.mrf.mxu0 }
  0xcc   :  { %v197_v55 = vadd.f32 %v855_v23, %v196_v54  ;;  %v1035_v51 = vpop.f32.mrf.mxu1 }
  0xce   :  { %v208_v56 = vmax.f32 %v197_v55, 0.0  ;;  %v845_v55 = vld [vmem:[#allocation2 + $0x110] sm:$0xff] }
  0xcf   :  { %611 = vmatpush.bf16.msrb.mxu1 %v845_v55 }
  0xd0   :  { %v339_v57 = vpack.c.bf16 %v208_v56, %v208_v56 }
  0xd2   :  { %396 = vmatmul.bf16.vlgmr.msrb.gmra.mxu0 %v339_v57 }
  0xd3   :  { %v198_v58 = vpop.f32.mrf.mxu0  ;;  %612 = vmatpush.bf16.msrb.mxu1 %v844_v0 }
  0xd4   :  { %v240_v6 = vpop.f32.mrf.mxu1 }
 0x11d   :  { %v319_v5 = vpop.f32.mrf.mxu2 }
 0x125   :  { %v321_v7 = vpop.f32.mrf.mxu2 }
 0x12d   :  { %v324_v8 = vpop.f32.mrf.mxu2 }
 0x135   :  { %v326_v14 = vpop.f32.mrf.mxu2 }
 0x13d   :  { %v329_v19 = vpop.f32.mrf.mxu2 }
 0x145   :  { %v331_v24 = vpop.f32.mrf.mxu2 }
 0x14d   :  { %v334_v29 = vpop.f32.mrf.mxu2 }
 0x14f   :  { %v397_v11 = vpop.f32.mrf.mxu0 }
 0x150   :  { %v401_v12 = vadd.f32 %v397_v11, %v319_v5  ;;  %v402_v13 = vadd.f32 %v397_v11, %v321_v7  ;;  %v403_v20 = vadd.f32 %v397_v11, %v324_v8  ;;  %v404_v22 = vadd.f32 %v397_v11, %v326_v14  ;;  %v843_v7 = vld [vmem:[#allocation2 + $0x100] sm:$0xff]  ;;  %v842_v14 = vld [vmem:[#allocation2 + $0xf8] sm:$0xff] }
 0x151   :  { %v405_v27 = vadd.f32 %v397_v11, %v329_v19  ;;  %v406_v28 = vadd.f32 %v397_v11, %v331_v24  ;;  %v407_v2 = vadd.f32 %v397_v11, %v334_v29  ;;  %613 = vmatpush.bf16.msrb.mxu1 %v843_v7 }
 0x152   :  { %857 = vtanh.f32 %v401_v12 }
 0x153   :  { %859 = vtanh.f32 %v402_v13 }
 0x154   :  { %861 = vtanh.f32 %v403_v20 }
 0x155   :  { %863 = vtanh.f32 %v404_v22  ;;  %v336_v32 = vpop.f32.mrf.mxu2  ;;  %614 = vmatpush.bf16.msrb.mxu1 %v842_v14 }
 0x156   :  { %865 = vtanh.f32 %v405_v27  ;;  %v408_v34 = vadd.f32 %v397_v11, %v336_v32  ;;  %v840_v27 = vld [vmem:[#allocation2 + $0xe8] sm:$0xff]  ;;  %v839_v32 = vld [vmem:[#allocation2 + $0xe0] sm:$0xff] }
 0x157   :  { %v399_v15 = vpop.f32.mrf.mxu0  ;;  %867 = vtanh.f32 %v406_v28 }
 0x158   :  { %v858_v16 = vpop.eup %857  ;;  %869 = vtanh.f32 %v408_v34 }
 0x159   :  { %v860_v17 = vpop.eup %859  ;;  %871 = vtanh.f32 %v407_v2  ;;  %615 = vmatpush.bf16.msrb.mxu1 %v841_v21 }
 0x15a   :  { %v417_v18 = vpack.c.bf16 %v860_v17, %v858_v16  ;;  %v862_v23 = vpop.eup %861 }
 0x15b   :  { %v864_v25 = vpop.eup %863 }
 0x15c   :  { %477 = vmatmul.bf16.vlgmr.msra.gmra.mxu3 %v417_v18  ;;  %v418_v26 = vpack.c.bf16 %v864_v25, %v862_v23  ;;  %v866_v30 = vpop.eup %865  ;;  %v242_v23 = vpop.f32.mrf.mxu1 }
 0x15d   :  { %v868_v31 = vpop.eup %867  ;;  %616 = vmatpush.bf16.msrb.mxu1 %v840_v27 }
 0x15e   :  { %v419_v33 = vpack.c.bf16 %v868_v31, %v866_v30  ;;  %v870_v35 = vpop.eup %869 }
 0x15f   :  { %v872_v36 = vpop.eup %871 }
 0x160   :  { %v420_v37 = vpack.c.bf16 %v870_v35, %v872_v36 }
 0x161   :  { %617 = vmatpush.bf16.msrb.mxu1 %v839_v32 }
 0x164   :  { %v245_v2 = vpop.f32.mrf.mxu1 }
 0x16c   :  { %482 = vmatmul.bf16.gmra.mxu3 %v418_v26 }
 0x17c   :  { %487 = vmatmul.bf16.gmra.mxu3 %v419_v33 }
 0x18c   :  { %492 = vmatmul.bf16.gmra.mxu3 %v420_v37 }
 0x1df   :  { %v478_v3 = vpop.f32.mrf.mxu3 }
 0x1e7   :  { %v480_v38 = vpop.f32.mrf.mxu3 }
 0x1ef   :  { %v483_v39 = vpop.f32.mrf.mxu3 }
 0x1f7   :  { %v485_v41 = vpop.f32.mrf.mxu3 }
 0x1ff   :  { %v488_v43 = vpop.f32.mrf.mxu3 }
 0x200   :  { %v498_v49 = vmax.f32 %v478_v3, %v488_v43 }
 0x207   :  { %v490_v4 = vpop.f32.mrf.mxu3 }
 0x208   :  { %v499_v47 = vmax.f32 %v480_v38, %v490_v4 }
 0x20a   :  { %v502_v52 = vmax.f32 %v498_v49, %v499_v47 }
 0x20f   :  { %v493_v45 = vpop.f32.mrf.mxu3 }
 0x210   :  { %v500_v50 = vmax.f32 %v483_v39, %v493_v45 }
 0x217   :  { %v495_v48 = vpop.f32.mrf.mxu3 }
 0x218   :  { %v501_v10 = vmax.f32 %v485_v41, %v495_v48 }
 0x21a   :  { %v503_v53 = vmax.f32 %v500_v50, %v501_v10 }
 0x21c   :  { %v504_v54 = vmax.f32 %v502_v52, %v503_v53 }
 0x21e   :  { %v505_v56 = vsub.f32 %v478_v3, %v504_v54  ;;  %v506_v57 = vsub.f32 %v480_v38, %v504_v54  ;;  %v507_v58 = vsub.f32 %v483_v39, %v504_v54  ;;  %v508_v59 = vsub.f32 %v485_v41, %v504_v54 }
 0x21f   :  { %v509_v62 = vsub.f32 %v488_v43, %v504_v54  ;;  %v510_v1 = vsub.f32 %v490_v4, %v504_v54  ;;  %v511_v8 = vsub.f32 %v493_v45, %v504_v54  ;;  %v512_v11 = vsub.f32 %v495_v48, %v504_v54  ;;  %v247_v4 = vpop.f32.mrf.mxu1 }
 0x220   :  { %v513_v60 = vmul.f32 1.442695, %v505_v56  ;;  %v515_v61 = vmul.f32 1.442695, %v506_v57  ;;  %v517_v63 = vmul.f32 1.442695, %v507_v58 }
 0x221   :  { %v519_v5 = vmul.f32 1.442695, %v508_v59  ;;  %v521_v9 = vmul.f32 1.442695, %v509_v62  ;;  %v523_v12 = vmul.f32 1.442695, %v510_v1 }
 0x222   :  { %873 = vpow2.f32 %v513_v60  ;;  %v525_v16 = vmul.f32 1.442695, %v511_v8  ;;  %v527_v19 = vmul.f32 1.442695, %v512_v11 }
 0x223   :  { %875 = vpow2.f32 %v515_v61 }
 0x224   :  { %877 = vpow2.f32 %v517_v63 }
 0x225   :  { %879 = vpow2.f32 %v519_v5  ;;  %v856_v5 = vld [vmem:[%s1049_s2 + $0x1] ss:$0 sm:$0xff] }
 0x226   :  { %881 = vpow2.f32 %v521_v9 }
 0x227   :  { %883 = vpow2.f32 %v523_v12 }
 0x228   :  { %v874_v13 = vpop.eup %873  ;;  %885 = vpow2.f32 %v525_v16 }
 0x229   :  { %v876_v15 = vpop.eup %875  ;;  %887 = vpow2.f32 %v527_v19 }
 0x22a   :  { %v529_v17 = vadd.f32 %v876_v15, %v874_v13  ;;  %v878_v18 = vpop.eup %877 }
 0x22b   :  { %v880_v22 = vpop.eup %879 }
 0x22c   :  { %v530_v20 = vadd.f32 %v878_v18, %v529_v17  ;;  %v882_v25 = vpop.eup %881 }
 0x22d   :  { %v884_v28 = vpop.eup %883 }
 0x22e   :  { %v531_v24 = vadd.f32 %v880_v22, %v530_v20  ;;  %v886_v30 = vpop.eup %885 }
 0x22f   :  { %v888_v33 = vpop.eup %887 }
 0x230   :  { %v532_v26 = vadd.f32 %v882_v25, %v531_v24 }
 0x232   :  { %v533_v29 = vadd.f32 %v884_v28, %v532_v26 }
 0x234   :  { %v534_v31 = vadd.f32 %v886_v30, %v533_v29 }
 0x236   :  { %v535_v34 = vadd.f32 %v888_v33, %v534_v31 }
 0x238   :  { %889 = vrcp.f32 %v535_v34 }
 0x239   :  { %891 = vtanh.f32 %v1029_v42 }
 0x23a   :  { %893 = vtanh.f32 %v1031_v44 }
 0x23b   :  { %895 = vtanh.f32 %v1033_v46 }
 0x23c   :  { %897 = vtanh.f32 %v1035_v51 }
 0x23d   :  { %899 = vtanh.f32 %v240_v6 }
 0x23e   :  { %v890_v35 = vpop.eup %889  ;;  %901 = vtanh.f32 %v242_v23 }
 0x23f   :  { %v892_v36 = vpop.eup %891  ;;  %v537_v37 = vmul.f32 %v890_v35, %v874_v13  ;;  %v538_v3 = vmul.f32 %v890_v35, %v876_v15  ;;  %v539_v38 = vmul.f32 %v890_v35, %v878_v18  ;;  %v540_v40 = vmul.f32 %v890_v35, %v880_v22 }
 0x240   :  { %v894_v39 = vpop.eup %893  ;;  %903 = vtanh.f32 %v245_v2  ;;  %v541_v47 = vmul.f32 %v890_v35, %v882_v25  ;;  %v542_v50 = vmul.f32 %v890_v35, %v884_v28  ;;  %v543_v54 = vmul.f32 %v890_v35, %v886_v30 }
 0x241   :  { %v545_v41 = vmul.f32 %v892_v36, %v537_v37  ;;  %v546_v43 = vmul.f32 %v894_v39, %v538_v3  ;;  %v896_v45 = vpop.eup %895  ;;  %905 = vtanh.f32 %v247_v4  ;;  %v544_v58 = vmul.f32 %v890_v35, %v888_v33 }
 0x242   :  { %v547_v42 = vmul.f32 %v896_v45, %v539_v38  ;;  %v898_v46 = vpop.eup %897 }
 0x243   :  { %v553_v44 = vadd.f32 %v546_v43, %v545_v41  ;;  %v548_v48 = vmul.f32 %v898_v46, %v540_v40  ;;  %v900_v10 = vpop.eup %899 }
 0x244   :  { %v902_v51 = vpop.eup %901  ;;  %v549_v53 = vmul.f32 %v900_v10, %v541_v47 }
 0x245   :  { %v554_v49 = vadd.f32 %v553_v44, %v547_v42  ;;  %v550_v57 = vmul.f32 %v902_v51, %v542_v50 }
 0x246   :  { %v904_v55 = vpop.eup %903 }
 0x247   :  { %v555_v52 = vadd.f32 %v554_v49, %v548_v48  ;;  %v906_v59 = vpop.eup %905  ;;  %v551_v60 = vmul.f32 %v904_v55, %v543_v54 }
 0x248   :  { %v552_v62 = vmul.f32 %v906_v59, %v544_v58 }
 0x249   :  { %v556_v56 = vadd.f32 %v555_v52, %v549_v53 }
 0x24b   :  { %v557_v61 = vadd.f32 %v556_v56, %v550_v57 }
 0x24d   :  { %v558_v63 = vadd.f32 %v557_v61, %v551_v60 }
 0x24f   :  { %v559_v0 = vadd.f32 %v558_v63, %v552_v62 }
 0x251   :  { %v560_v1 = vpack.c.bf16 %v559_v0, %v559_v0 }
 0x253   :  { %618 = vmatmul.bf16.vlgmr.msrb.gmra.mxu1 %v560_v1 }
 0x2d0   :  { %v619_v6 = vpop.f32.mrf.mxu1 }
 0x2d1   :  { %v620_v7 = vadd.f32 %v856_v5, %v619_v6 }
 0x2d3   :  { %v623_v8 = vmax.f32 %v620_v7, 0.0 }
 0x2d5   :  { %624 = vst [vmem:[#allocation5] sm:$0xff] %v623_v8 }
 0x2d6   :  { %635 = dma.vmem_to_hbm [thread:$0]  %s631_s5, 128, %s633_s8, [#allocation4]  }
 0x2d8   :  { %v621_v9 = vpop.f32.mrf.mxu1 }
 0x2d9   :  { %957 = dma.done.wait [#allocation4], 128  }
 0x2da   :  { %958 = vsyncadd [#allocation4], 4294967168 }
 0x2db   :  { %640 = vsyncpa [#allocation3], 1 }
 0x2dc   :  { %641 = vsyncpa [#allocation4], 1 }

</bundles_post_ra>
